<compile_context>
chip_gen: v7x
topology: tpu7x:2x2x1
jax: 0.10.0
libtpu: 0.0.40
codegen_flags: <defaults>
</compile_context>

<pallas_src>
import jax
import jax.numpy as jnp
from jax.experimental import pallas as pl
from jax.experimental.pallas import tpu as pltpu

EPS = 1e-5       # PyTorch BatchNorm1d default eps
LANE = 128


def _round_up(x, m):
    return (x + m - 1) // m * m


def _tpu_vmem_cap_bytes():
    try:
        return int(pltpu.get_tpu_info().vmem_capacity_bytes)
    except Exception:
        return 64 << 20            # conservative (v7x per-core VMEM)


# ------------------------------ kernel math ----------------------------------


def _bn_eval(x, p):
    # p: (4, dim) rows = [gamma, beta, running_mean, running_var]
    # TODO(synk): training-mode BatchNorm1d uses batch statistics; eval-mode
    # running-stats normalization is implemented here.
    return (x - p[2, :]) * jax.lax.rsqrt(p[3, :] + EPS) * p[0, :] + p[1, :]


def _gelu(x):
    # TODO(synk): PyTorch nn.GELU() default is the exact erf form; the tanh
    # approximation is used (Mosaic erf lowering availability varies).
    c = jnp.float32(0.7978845608028654)  # sqrt(2/pi)
    return 0.5 * x * (1.0 + jnp.tanh(c * (x + 0.044715 * x * x * x)))


def _mean_pool_f32(emb_ref):
    # AdaptiveAvgPool1d(1) over tokens; bf16 input, f32 accumulation (no
    # wrapper-side full-slab f32 cast).
    inv_l = jnp.float32(1.0 / emb_ref.shape[1])
    return jnp.sum(emb_ref[...], axis=1, dtype=jnp.float32) * inv_l


def _mxu_dot(x_f32, w_ref):
    # Cast activations to the (bf16) weight dtype so the MXU runs natively;
    # accumulate in f32.
    return jnp.dot(x_f32.astype(w_ref.dtype), w_ref[...],
                   preferred_element_type=jnp.float32)


# --------------------------------- kernels ------------------------------------


def neck_after_kernel(emb_ref, bn_ref, cat_ref):
    # eval path, neck_feat == 'after': torch.cat([feat, attr_feat_bn], dim=1)
    gf = _mean_pool_f32(emb_ref)
    bn = bn_ref[...]
    d = gf.shape[-1]
    cat_ref[:, :d] = _bn_eval(gf, bn[0:4, :])       # self.bottleneck
    cat_ref[:, d:] = _bn_eval(gf, bn[4:8, :])       # self.bottleneck_grl


def neck_before_kernel(emb_ref, gf_ref):
    # eval path, neck_feat != 'after': torch.cat([global_feat], dim=1)
    gf_ref[...] = _mean_pool_f32(emb_ref)


def fused_train_kernel(emb_ref, bn_ref, wcls_ref,
                       w1_ref, bn1_ref, w2_ref, bn2_ref, w3_ref, bn3_ref,
                       w4_ref, gf_ref, cls_ref, attr_cls_ref, feat_sc):
    # grid = (batch blocks, class tiles).  The neck + GRL-MLP run once per
    # batch block (class tile 0); the classifier runs per class tile using the
    # VMEM-resident `feat` scratch.
    @pl.when(pl.program_id(1) == 0)
    def _():
        gf = _mean_pool_f32(emb_ref)
        bn = bn_ref[...]
        feat = _bn_eval(gf, bn[0:4, :])             # self.bottleneck
        attr = _bn_eval(gf, bn[4:8, :])             # self.bottleneck_grl
        gf_ref[...] = gf
        feat_sc[...] = feat.astype(feat_sc.dtype)

        # self.classifier_grl: RevGrad (identity fwd) -> [Linear/BN/GELU/Dropout]x3 -> Linear
        # TODO(synk): nn.Dropout2d is identity at inference; training-mode
        # dropout randomness is not replicated.
        h = _gelu(_bn_eval(_mxu_dot(attr, w1_ref), bn1_ref[...]))
        h = _gelu(_bn_eval(_mxu_dot(h, w2_ref), bn2_ref[...]))
        h = _gelu(_bn_eval(_mxu_dot(h, w3_ref), bn3_ref[...]))
        attr_cls_ref[...] = _mxu_dot(h, w4_ref)

    # self.classifier: Linear(in_planes, num_classes, bias=False), class-tiled.
    cls_ref[...] = jnp.dot(feat_sc[...], wcls_ref[...],
                           preferred_element_type=jnp.float32)


# --------------------------- pallas wrappers ----------------------------------


def _pick_block_b(B, L, D, itemsize, vmem_cap):
    # Batch-block rows sized per-chip; keep >= 2 grid steps when B allows so
    # the 'parallel' batch axis can shard across both v7x TensorCores.
    if vmem_cap >= (100 << 20):          # 128-MiB VMEM parts (v5e / v6e)
        budget, row_cap = 24 << 20, 256
    else:                                # v7x (64 MiB per core)
        budget, row_cap = 10 << 20, 128
    rows = max(1, budget // max(1, L * D * itemsize))
    bb = max(8, min(row_cap, (rows // 8) * 8))
    if B > 8:
        bb = min(bb, _round_up((B + 1) // 2, 8))
    return B if B <= bb else bb


def _prep_emb(all_patch_emb, vmem_cap):
    B, L, D = all_patch_emb.shape
    bb = _pick_block_b(B, L, D, all_patch_emb.dtype.itemsize, vmem_cap)
    Bp = _round_up(B, bb)
    emb = all_patch_emb
    if Bp != B:
        emb = jnp.pad(emb, ((0, Bp - B), (0, 0), (0, 0)))
    return emb, B, L, D, bb, Bp


_SINGLE_BUFFER = [True]    # use pl.Buffered(1) for stationary operands if supported


def _stationary_spec(arr, single, grid_rank):
    nd = arr.ndim
    if grid_rank == 1:
        imap = lambda b: (0,) * nd
    else:
        imap = lambda b, c: (0,) * nd
    if single:
        # constant index_map -> no need for double buffering; halves weight VMEM.
        return pl.BlockSpec(arr.shape, imap, pipeline_mode=pl.Buffered(1))
    return pl.BlockSpec(arr.shape, imap)


def _run(builder, args):
    # builder(single_buffer: bool) -> pallas_call callable.  Fall back to
    # default double buffering if single-buffered stationary operands are not
    # supported by this Pallas version.
    if _SINGLE_BUFFER[0]:
        try:
            return builder(True)(*args)
        except Exception:
            _SINGLE_BUFFER[0] = False
    return builder(False)(*args)


def _clamp_vmem(est, cap):
    return int(min(max(est, 32 << 20), cap - (2 << 20)))


def eval_forward(all_patch_emb, params, neck_feat="after"):
    cap = _tpu_vmem_cap_bytes()
    emb, B, L, D, bb, Bp = _prep_emb(all_patch_emb, cap)
    grid = (Bp // bb,)
    bn = params["bottleneck_pair"]
    emb_bytes = bb * L * D * emb.dtype.itemsize
    # emb double-buffer + possible f32 reduce temp + output double-buffer + bn + headroom
    est = (2 * emb_bytes + bb * L * D * 4 + 2 * bb * 2 * D * 4
           + 2 * int(bn.size) * bn.dtype.itemsize + (4 << 20))
    cparams = pltpu.CompilerParams(dimension_semantics=("parallel",),
                                   vmem_limit_bytes=_clamp_vmem(est, cap))

    if neck_feat == "after":
        def builder(single):
            return pl.pallas_call(
                neck_after_kernel,
                out_shape=jax.ShapeDtypeStruct((Bp, 2 * D), jnp.float32),
                grid=grid,
                in_specs=[pl.BlockSpec((bb, L, D), lambda b: (b, 0, 0)),
                          _stationary_spec(bn, single, 1)],
                out_specs=pl.BlockSpec((bb, 2 * D), lambda b: (b, 0)),
                compiler_params=cparams)
        return _run(builder, (emb, bn))[:B]

    gf = pl.pallas_call(
        neck_before_kernel,
        out_shape=jax.ShapeDtypeStruct((Bp, D), jnp.float32),
        grid=grid,
        in_specs=[pl.BlockSpec((bb, L, D), lambda b: (b, 0, 0))],
        out_specs=pl.BlockSpec((bb, D), lambda b: (b, 0)),
        compiler_params=cparams)(emb)
    return gf[:B]


def _pick_class_tile(Cp):
    if Cp <= 512:
        return Cp
    for t in (512, 384, 256, 128):
        if Cp % t == 0:
            return t
    return Cp


def train_forward(all_patch_emb, params, num_classes, num_attributes):
    cap = _tpu_vmem_cap_bytes()
    emb, B, L, D, bb, Bp = _prep_emb(all_patch_emb, cap)
    bn = params["bottleneck_pair"]
    w_cls = params["w_cls"]
    stationary = [bn, params["w1"], params["bn1"], params["w2"], params["bn2"],
                  params["w3"], params["bn3"], params["w4"]]
    Cp = w_cls.shape[1]
    Ap = params["w4"].shape[1]
    tc = _pick_class_tile(Cp)
    grid = (Bp // bb, Cp // tc)

    emb_bytes = bb * L * D * emb.dtype.itemsize
    stat_bytes = sum(int(p.size) * p.dtype.itemsize for p in stationary)
    est = (2 * emb_bytes + bb * L * D * 4           # emb double-buffer + f32 reduce temp
           + 2 * stat_bytes                         # conservative (covers fallback)
           + 2 * D * tc * w_cls.dtype.itemsize      # classifier weight tile (double-buffered)
           + 2 * bb * (D + tc + Ap) * 4             # output double buffers
           + bb * D * 2 + (4 << 20))                # feat scratch + headroom
    vmem = _clamp_vmem(est, cap)

    def builder(single):
        return pl.pallas_call(
            fused_train_kernel,
            out_shape=(jax.ShapeDtypeStruct((Bp, D), jnp.float32),
                       jax.ShapeDtypeStruct((Bp, Cp), jnp.float32),
                       jax.ShapeDtypeStruct((Bp, Ap), jnp.float32)),
            grid=grid,
            in_specs=[pl.BlockSpec((bb, L, D), lambda b, c: (b, 0, 0)),
                      _stationary_spec(bn, single, 2),
                      pl.BlockSpec((D, tc), lambda b, c: (0, c)),
                      _stationary_spec(params["w1"], single, 2),
                      _stationary_spec(params["bn1"], single, 2),
                      _stationary_spec(params["w2"], single, 2),
                      _stationary_spec(params["bn2"], single, 2),
                      _stationary_spec(params["w3"], single, 2),
                      _stationary_spec(params["bn3"], single, 2),
                      _stationary_spec(params["w4"], single, 2)],
            out_specs=(pl.BlockSpec((bb, D), lambda b, c: (b, 0)),
                       pl.BlockSpec((bb, tc), lambda b, c: (b, c)),
                       pl.BlockSpec((bb, Ap), lambda b, c: (b, 0))),
            scratch_shapes=[pltpu.VMEM((bb, D), jnp.bfloat16)],  # feat, reused per class tile
            compiler_params=pltpu.CompilerParams(
                dimension_semantics=("parallel", "arbitrary"),
                vmem_limit_bytes=vmem))

    args = (emb, bn, w_cls, params["w1"], params["bn1"], params["w2"],
            params["bn2"], params["w3"], params["bn3"], params["w4"])
    gf, cls_p, attr_p = _run(builder, args)
    return cls_p[:B, :num_classes], attr_p[:B, :num_attributes], gf[:B]


def model_forward(all_patch_emb, params, num_classes, num_attributes,
                  training=False, neck_feat="after"):
    if training:
        cls_score, cls_score_attr, global_feat = train_forward(
            all_patch_emb, params, num_classes, num_attributes)
        return [cls_score, cls_score_attr], [global_feat, global_feat]
    return eval_forward(all_patch_emb, params, neck_feat)


# ------------------------- deterministic params --------------------------------


def _bn_pack(dim, pad_to=None):
    # weights_init_kaiming / default BN init: gamma=1, beta=0, rm=0, rv=1.
    # Padded channels get gamma=0 so they stay exactly zero through the MLP.
    d = dim if pad_to is None else pad_to
    gamma = jnp.zeros((d,), jnp.float32).at[:dim].set(1.0)
    beta = jnp.zeros((d,), jnp.float32)
    rm = jnp.zeros((d,), jnp.float32)
    rv = jnp.ones((d,), jnp.float32)
    return jnp.stack([gamma, beta, rm, rv], axis=0)


def init_params(key, in_planes, num_classes, num_attributes):
    ks = jax.random.split(key, 5)

    def lin(k, fan_in, fan_out, pad_in=None, pad_out=None):
        # weights_init_classifier: normal(std=0.001), bias=False (PyTorch shape
        # (out, in)); stored transposed to (in, out), zero-padded so each matmul
        # N dim is a multiple of 128, and cast to bf16 (MXU-native, half HBM/VMEM).
        w = (jax.random.normal(k, (fan_out, fan_in), jnp.float32) * 1e-3).T
        pi = pad_in or fan_in
        po = pad_out or fan_out
        full = jnp.zeros((pi, po), jnp.float32).at[:fan_in, :fan_out].set(w)
        return full.astype(jnp.bfloat16)

    cp = _round_up(num_classes, LANE)
    ap = _round_up(num_attributes, LANE)
    h1, h2, h3 = 384, 96, 48
    h2p, h3p = _round_up(h2, LANE), _round_up(h3, LANE)

    return dict(
        # [self.bottleneck (4,D); self.bottleneck_grl (4,D)] — kept in f32
        bottleneck_pair=jnp.concatenate(
            [_bn_pack(in_planes), _bn_pack(in_planes)], axis=0),
        w_cls=lin(ks[0], in_planes, num_classes, pad_out=cp),
        w1=lin(ks[1], in_planes, h1),
        bn1=_bn_pack(h1),
        w2=lin(ks[2], h1, h2, pad_out=h2p),
        bn2=_bn_pack(h2, pad_to=h2p),
        w3=lin(ks[3], h2, h3, pad_in=h2p, pad_out=h3p),
        bn3=_bn_pack(h3, pad_to=h3p),
        w4=lin(ks[4], h3, num_attributes, pad_in=h3p, pad_out=ap),
    )


# --------------------------------- demo -----------------------------------------

if __name__ == "__main__":
    B, L, D = 2, 8, 32            # batch, seq tokens, embed dim (scaled-down in_planes)
    num_classes, num_attributes = 16, 8

    key = jax.random.PRNGKey(0)
    k_emb, k_par = jax.random.split(key)
    # TODO(synk): Swin-B backbone output is mocked with random (B, L, D) tokens (bf16).
    all_patch_emb = jax.random.normal(
        k_emb, (B, L, D), jnp.float32).astype(jnp.bfloat16)
    params = init_params(k_par, D, num_classes, num_attributes)

    # eval path (self.training=False, neck_feat='after'): cat([feat, attr_feat_bn], 1)
    out_eval = model_forward(all_patch_emb, params, num_classes, num_attributes,
                             training=False, neck_feat="after")
    # eval path (neck_feat='before'): torch.cat([global_feat], 1)
    out_before = model_forward(all_patch_emb, params, num_classes, num_attributes,
                               training=False, neck_feat="before")
    # training path: ([cls_score, cls_score_attr], [global_feat, global_feat])
    scores, feats = model_forward(all_patch_emb, params, num_classes, num_attributes,
                                  training=True)

    jax.block_until_ready(out_eval)
    jax.block_until_ready(out_before)
    jax.block_until_ready(scores)
    jax.block_until_ready(feats)

    assert out_eval.shape == (B, 2 * D)
    assert out_before.shape == (B, D)
    assert scores[0].shape == (B, num_classes)
    assert scores[1].shape == (B, num_attributes)
    assert feats[0].shape == (B, D)

    # numeric sanity: global_feat == mean over tokens (AdaptiveAvgPool1d(1), f32 acc)
    gf_ref = jnp.mean(all_patch_emb.astype(jnp.float32), axis=1)
    assert jnp.allclose(feats[0], gf_ref, atol=1e-5), "global_feat mismatch (train)"
    assert jnp.allclose(out_before, gf_ref, atol=1e-5), "global_feat mismatch (eval)"
    # BN eval-mode with default init: feat = gf * rsqrt(1 + eps)
    feat_ref = gf_ref * (1.0 / jnp.sqrt(1.0 + EPS))
    assert jnp.allclose(out_eval[:, :D], feat_ref, atol=1e-4), "bottleneck mismatch"
    assert jnp.allclose(out_eval[:, D:], feat_ref, atol=1e-4), "bottleneck_grl mismatch"

    print("KERNEL_OK")
</pallas_src>

<mosaic_0001>
module attributes {stable_mosaic.version = 11 : i64} {
  func.func @neck_after_kernel(%arg0: i32, %arg1: memref<2x8x32xbf16, #tpu.memory_space<vmem>>, %arg2: memref<8x32xf32, #tpu.memory_space<vmem>>, %arg3: memref<2x64xf32, #tpu.memory_space<vmem>>) attributes {dimension_semantics = [#tpu.dimension_semantics<parallel>], iteration_bounds = array<i64: 1>, scalar_prefetch = 0 : i64, scratch_operands = 0 : i64, tpu.core_type = #tpu.core_type<tc>, window_params = [{transform_indices = @transform_0, window_bounds = array<i64: 2, 8, 32>}, {pipeline_mode = #tpu.pipeline_mode<synchronous>, transform_indices = @transform_1, window_bounds = array<i64: 8, 32>}, {transform_indices = @transform_2, window_bounds = array<i64: 2, 64>}]} {
    %c0 = arith.constant 0 : index
    %c0_0 = arith.constant 0 : index
    %c0_1 = arith.constant 0 : index
    %0 = vector.load %arg1[%c0, %c0_0, %c0_1] : memref<2x8x32xbf16, #tpu.memory_space<vmem>>, vector<2x8x32xbf16>
    %1 = arith.extf %0 : vector<2x8x32xbf16> to vector<2x8x32xf32>
    %cst = arith.constant dense<0.000000e+00> : vector<2x32xf32>
    %2 = vector.multi_reduction <add>, %1, %cst [1] : vector<2x8x32xf32> to vector<2x32xf32>
    %cst_2 = arith.constant 1.250000e-01 : f32
    %3 = vector.broadcast %cst_2 : f32 to vector<2x32xf32>
    %4 = arith.mulf %2, %3 : vector<2x32xf32>
    %c0_3 = arith.constant 0 : index
    %c0_4 = arith.constant 0 : index
    %5 = vector.load %arg2[%c0_3, %c0_4] : memref<8x32xf32, #tpu.memory_space<vmem>>, vector<8x32xf32>
    %6 = vector.extract_strided_slice %5 {offsets = [0, 0], sizes = [4, 32], strides = [1, 1]} : vector<8x32xf32> to vector<4x32xf32>
    %7 = vector.extract_strided_slice %6 {offsets = [2, 0], sizes = [1, 32], strides = [1, 1]} : vector<4x32xf32> to vector<1x32xf32>
    %8 = vector.shape_cast %7 : vector<1x32xf32> to vector<32xf32>
    %9 = vector.shape_cast %8 : vector<32xf32> to vector<1x32xf32>
    %10 = vector.broadcast %9 : vector<1x32xf32> to vector<2x32xf32>
    %11 = arith.subf %4, %10 : vector<2x32xf32>
    %12 = vector.extract_strided_slice %6 {offsets = [3, 0], sizes = [1, 32], strides = [1, 1]} : vector<4x32xf32> to vector<1x32xf32>
    %13 = vector.shape_cast %12 : vector<1x32xf32> to vector<32xf32>
    %cst_5 = arith.constant 9.99999974E-6 : f32
    %14 = vector.broadcast %cst_5 : f32 to vector<32xf32>
    %15 = arith.addf %13, %14 : vector<32xf32>
    %16 = math.rsqrt %15 : vector<32xf32>
    %17 = vector.shape_cast %16 : vector<32xf32> to vector<1x32xf32>
    %18 = vector.broadcast %17 : vector<1x32xf32> to vector<2x32xf32>
    %19 = arith.mulf %11, %18 : vector<2x32xf32>
    %20 = vector.extract_strided_slice %6 {offsets = [0, 0], sizes = [1, 32], strides = [1, 1]} : vector<4x32xf32> to vector<1x32xf32>
    %21 = vector.shape_cast %20 : vector<1x32xf32> to vector<32xf32>
    %22 = vector.shape_cast %21 : vector<32xf32> to vector<1x32xf32>
    %23 = vector.broadcast %22 : vector<1x32xf32> to vector<2x32xf32>
    %24 = arith.mulf %19, %23 : vector<2x32xf32>
    %25 = vector.extract_strided_slice %6 {offsets = [1, 0], sizes = [1, 32], strides = [1, 1]} : vector<4x32xf32> to vector<1x32xf32>
    %26 = vector.shape_cast %25 : vector<1x32xf32> to vector<32xf32>
    %27 = vector.shape_cast %26 : vector<32xf32> to vector<1x32xf32>
    %28 = vector.broadcast %27 : vector<1x32xf32> to vector<2x32xf32>
    %29 = arith.addf %24, %28 : vector<2x32xf32>
    %c0_6 = arith.constant 0 : index
    %c0_7 = arith.constant 0 : index
    %30 = vector.load %arg3[%c0_6, %c0_7] : memref<2x64xf32, #tpu.memory_space<vmem>>, vector<2x32xf32>
    tpu.vector_store %arg3[%c0_6, %c0_7], %29 {strides = array<i32>} : memref<2x64xf32, #tpu.memory_space<vmem>>, vector<2x32xf32>,
    %31 = vector.extract_strided_slice %5 {offsets = [4, 0], sizes = [4, 32], strides = [1, 1]} : vector<8x32xf32> to vector<4x32xf32>
    %32 = vector.extract_strided_slice %31 {offsets = [2, 0], sizes = [1, 32], strides = [1, 1]} : vector<4x32xf32> to vector<1x32xf32>
    %33 = vector.shape_cast %32 : vector<1x32xf32> to vector<32xf32>
    %34 = vector.shape_cast %33 : vector<32xf32> to vector<1x32xf32>
    %35 = vector.broadcast %34 : vector<1x32xf32> to vector<2x32xf32>
    %36 = arith.subf %4, %35 : vector<2x32xf32>
    %37 = vector.extract_strided_slice %31 {offsets = [3, 0], sizes = [1, 32], strides = [1, 1]} : vector<4x32xf32> to vector<1x32xf32>
    %38 = vector.shape_cast %37 : vector<1x32xf32> to vector<32xf32>
    %cst_8 = arith.constant 9.99999974E-6 : f32
    %39 = vector.broadcast %cst_8 : f32 to vector<32xf32>
    %40 = arith.addf %38, %39 : vector<32xf32>
    %41 = math.rsqrt %40 : vector<32xf32>
    %42 = vector.shape_cast %41 : vector<32xf32> to vector<1x32xf32>
    %43 = vector.broadcast %42 : vector<1x32xf32> to vector<2x32xf32>
    %44 = arith.mulf %36, %43 : vector<2x32xf32>
    %45 = vector.extract_strided_slice %31 {offsets = [0, 0], sizes = [1, 32], strides = [1, 1]} : vector<4x32xf32> to vector<1x32xf32>
    %46 = vector.shape_cast %45 : vector<1x32xf32> to vector<32xf32>
    %47 = vector.shape_cast %46 : vector<32xf32> to vector<1x32xf32>
    %48 = vector.broadcast %47 : vector<1x32xf32> to vector<2x32xf32>
    %49 = arith.mulf %44, %48 : vector<2x32xf32>
    %50 = vector.extract_strided_slice %31 {offsets = [1, 0], sizes = [1, 32], strides = [1, 1]} : vector<4x32xf32> to vector<1x32xf32>
    %51 = vector.shape_cast %50 : vector<1x32xf32> to vector<32xf32>
    %52 = vector.shape_cast %51 : vector<32xf32> to vector<1x32xf32>
    %53 = vector.broadcast %52 : vector<1x32xf32> to vector<2x32xf32>
    %54 = arith.addf %49, %53 : vector<2x32xf32>
    %c0_9 = arith.constant 0 : index
    %c32 = arith.constant 32 : index
    %55 = vector.load %arg3[%c0_9, %c32] : memref<2x64xf32, #tpu.memory_space<vmem>>, vector<2x32xf32>
    tpu.vector_store %arg3[%c0_9, %c32], %54 {strides = array<i32>} : memref<2x64xf32, #tpu.memory_space<vmem>>, vector<2x32xf32>,
    return
  }
  func.func @transform_0(%arg0: i32) -> (i32, i32, i32) {
    %c0_i32 = arith.constant 0 : i32
    %c0_i32_0 = arith.constant 0 : i32
    %c0_i32_1 = arith.constant 0 : i32
    return %arg0, %c0_i32, %c0_i32_0 : i32, i32, i32
  }
  func.func @transform_1(%arg0: i32) -> (i32, i32) {
    %c0_i32 = arith.constant 0 : i32
    %c0_i32_0 = arith.constant 0 : i32
    %c0_i32_1 = arith.constant 0 : i32
    return %c0_i32, %c0_i32_0 : i32, i32
  }
  func.func @transform_2(%arg0: i32) -> (i32, i32) {
    %c0_i32 = arith.constant 0 : i32
    %c0_i32_0 = arith.constant 0 : i32
    return %arg0, %c0_i32 : i32, i32
  }
}

module attributes {stable_mosaic.version = 11 : i64} {
  func.func @neck_after_kernel(%arg0: i32, %arg1: memref<2x8x32xbf16, #tpu.memory_space<vmem>>, %arg2: memref<8x32xf32, #tpu.memory_space<vmem>>, %arg3: memref<2x64xf32, #tpu.memory_space<vmem>>) attributes {dimension_semantics = [#tpu.dimension_semantics<parallel>], iteration_bounds = array<i64: 1>, scalar_prefetch = 0 : i64, scratch_operands = 0 : i64, tpu.core_type = #tpu.core_type<tc>, window_params = [{transform_indices = @transform_0, window_bounds = array<i64: 2, 8, 32>}, {pipeline_mode = #tpu.pipeline_mode<synchronous>, transform_indices = @transform_1, window_bounds = array<i64: 8, 32>}, {transform_indices = @transform_2, window_bounds = array<i64: 2, 64>}]} {
    %c0 = arith.constant 0 : index
    %c0_0 = arith.constant 0 : index
    %c0_1 = arith.constant 0 : index
    %0 = vector.load %arg1[%c0, %c0_0, %c0_1] : memref<2x8x32xbf16, #tpu.memory_space<vmem>>, vector<2x8x32xbf16>
    %1 = arith.extf %0 : vector<2x8x32xbf16> to vector<2x8x32xf32>
    %cst = arith.constant dense<0.000000e+00> : vector<2x32xf32>
    %2 = vector.multi_reduction <add>, %1, %cst [1] : vector<2x8x32xf32> to vector<2x32xf32>
    %cst_2 = arith.constant 1.250000e-01 : f32
    %3 = vector.broadcast %cst_2 : f32 to vector<2x32xf32>
    %4 = arith.mulf %2, %3 : vector<2x32xf32>
    %c0_3 = arith.constant 0 : index
    %c0_4 = arith.constant 0 : index
    %5 = vector.load %arg2[%c0_3, %c0_4] : memref<8x32xf32, #tpu.memory_space<vmem>>, vector<8x32xf32>
    %6 = vector.extract_strided_slice %5 {offsets = [0, 0], sizes = [4, 32], strides = [1, 1]} : vector<8x32xf32> to vector<4x32xf32>
    %7 = vector.extract_strided_slice %6 {offsets = [2, 0], sizes = [1, 32], strides = [1, 1]} : vector<4x32xf32> to vector<1x32xf32>
    %8 = vector.shape_cast %7 : vector<1x32xf32> to vector<32xf32>
    %9 = vector.shape_cast %8 : vector<32xf32> to vector<1x32xf32>
    %10 = vector.broadcast %9 : vector<1x32xf32> to vector<2x32xf32>
    %11 = arith.subf %4, %10 : vector<2x32xf32>
    %12 = vector.extract_strided_slice %6 {offsets = [3, 0], sizes = [1, 32], strides = [1, 1]} : vector<4x32xf32> to vector<1x32xf32>
    %13 = vector.shape_cast %12 : vector<1x32xf32> to vector<32xf32>
    %cst_5 = arith.constant 9.99999974E-6 : f32
    %14 = vector.broadcast %cst_5 : f32 to vector<32xf32>
    %15 = arith.addf %13, %14 : vector<32xf32>
    %16 = math.rsqrt %15 : vector<32xf32>
    %17 = vector.shape_cast %16 : vector<32xf32> to vector<1x32xf32>
    %18 = vector.broadcast %17 : vector<1x32xf32> to vector<2x32xf32>
    %19 = arith.mulf %11, %18 : vector<2x32xf32>
    %20 = vector.extract_strided_slice %6 {offsets = [0, 0], sizes = [1, 32], strides = [1, 1]} : vector<4x32xf32> to vector<1x32xf32>
    %21 = vector.shape_cast %20 : vector<1x32xf32> to vector<32xf32>
    %22 = vector.shape_cast %21 : vector<32xf32> to vector<1x32xf32>
    %23 = vector.broadcast %22 : vector<1x32xf32> to vector<2x32xf32>
    %24 = arith.mulf %19, %23 : vector<2x32xf32>
    %25 = vector.extract_strided_slice %6 {offsets = [1, 0], sizes = [1, 32], strides = [1, 1]} : vector<4x32xf32> to vector<1x32xf32>
    %26 = vector.shape_cast %25 : vector<1x32xf32> to vector<32xf32>
    %27 = vector.shape_cast %26 : vector<32xf32> to vector<1x32xf32>
    %28 = vector.broadcast %27 : vector<1x32xf32> to vector<2x32xf32>
    %29 = arith.addf %24, %28 : vector<2x32xf32>
    %c0_6 = arith.constant 0 : index
    %c0_7 = arith.constant 0 : index
    %30 = vector.load %arg3[%c0_6, %c0_7] : memref<2x64xf32, #tpu.memory_space<vmem>>, vector<2x32xf32>
    tpu.vector_store %arg3[%c0_6, %c0_7], %29 {strides = array<i32>} : memref<2x64xf32, #tpu.memory_space<vmem>>, vector<2x32xf32>,
    %31 = vector.extract_strided_slice %5 {offsets = [4, 0], sizes = [4, 32], strides = [1, 1]} : vector<8x32xf32> to vector<4x32xf32>
    %32 = vector.extract_strided_slice %31 {offsets = [2, 0], sizes = [1, 32], strides = [1, 1]} : vector<4x32xf32> to vector<1x32xf32>
    %33 = vector.shape_cast %32 : vector<1x32xf32> to vector<32xf32>
    %34 = vector.shape_cast %33 : vector<32xf32> to vector<1x32xf32>
    %35 = vector.broadcast %34 : vector<1x32xf32> to vector<2x32xf32>
    %36 = arith.subf %4, %35 : vector<2x32xf32>
    %37 = vector.extract_strided_slice %31 {offsets = [3, 0], sizes = [1, 32], strides = [1, 1]} : vector<4x32xf32> to vector<1x32xf32>
    %38 = vector.shape_cast %37 : vector<1x32xf32> to vector<32xf32>
    %cst_8 = arith.constant 9.99999974E-6 : f32
    %39 = vector.broadcast %cst_8 : f32 to vector<32xf32>
    %40 = arith.addf %38, %39 : vector<32xf32>
    %41 = math.rsqrt %40 : vector<32xf32>
    %42 = vector.shape_cast %41 : vector<32xf32> to vector<1x32xf32>
    %43 = vector.broadcast %42 : vector<1x32xf32> to vector<2x32xf32>
    %44 = arith.mulf %36, %43 : vector<2x32xf32>
    %45 = vector.extract_strided_slice %31 {offsets = [0, 0], sizes = [1, 32], strides = [1, 1]} : vector<4x32xf32> to vector<1x32xf32>
    %46 = vector.shape_cast %45 : vector<1x32xf32> to vector<32xf32>
    %47 = vector.shape_cast %46 : vector<32xf32> to vector<1x32xf32>
    %48 = vector.broadcast %47 : vector<1x32xf32> to vector<2x32xf32>
    %49 = arith.mulf %44, %48 : vector<2x32xf32>
    %50 = vector.extract_strided_slice %31 {offsets = [1, 0], sizes = [1, 32], strides = [1, 1]} : vector<4x32xf32> to vector<1x32xf32>
    %51 = vector.shape_cast %50 : vector<1x32xf32> to vector<32xf32>
    %52 = vector.shape_cast %51 : vector<32xf32> to vector<1x32xf32>
    %53 = vector.broadcast %52 : vector<1x32xf32> to vector<2x32xf32>
    %54 = arith.addf %49, %53 : vector<2x32xf32>
    %c0_9 = arith.constant 0 : index
    %c32 = arith.constant 32 : index
    %55 = vector.load %arg3[%c0_9, %c32] : memref<2x64xf32, #tpu.memory_space<vmem>>, vector<2x32xf32>
    tpu.vector_store %arg3[%c0_9, %c32], %54 {strides = array<i32>} : memref<2x64xf32, #tpu.memory_space<vmem>>, vector<2x32xf32>,
    return
  }
  func.func @transform_0(%arg0: i32) -> (i32, i32, i32) {
    %c0_i32 = arith.constant 0 : i32
    %c0_i32_0 = arith.constant 0 : i32
    %c0_i32_1 = arith.constant 0 : i32
    return %arg0, %c0_i32, %c0_i32_0 : i32, i32, i32
  }
  func.func @transform_1(%arg0: i32) -> (i32, i32) {
    %c0_i32 = arith.constant 0 : i32
    %c0_i32_0 = arith.constant 0 : i32
    %c0_i32_1 = arith.constant 0 : i32
    return %c0_i32, %c0_i32_0 : i32, i32
  }
  func.func @transform_2(%arg0: i32) -> (i32, i32) {
    %c0_i32 = arith.constant 0 : i32
    %c0_i32_0 = arith.constant 0 : i32
    return %arg0, %c0_i32 : i32, i32
  }
}

</mosaic_0001>

<bundles_post_ra>
// kernel: tpu_custom_call.1
= control target key start
LH: loop header
LB: loop body
LE: loop exit
PB: predicated region body
PF: predicated region fallthrough
CT: control target
= control target key end

     0   :  { %7 = vsyncpa [#allocation3], 0  ;;  %s284_s0 = inlined_call_operand.hbm [shape: bf16[2,8,32], index: 0, kind: input, shape index: {}]   ;;  %s285_s1 = inlined_call_operand.hbm [shape: f32[8,32], index: 1, kind: input, shape index: {}]   ;;  %s286_s2 = inlined_call_operand.hbm [shape: f32[2,64], index: 2, kind: output, shape index: {}]  }
   0x1   :  { %8 = vsyncpa [#allocation6], 0 }
   0x2   :  { %9 = vsyncpa [#allocation4], 0  ;;  %s227_s9 = smov [#allocation2]   ;;  %s155_s13 = scalar_lea.hbm %s284_s0, 128 }
   0x3   :  { %s15_s10 = sshll.u32 %s227_s9, 4  ;;  %p156_p0 = scmp.ne.s32.totalorder %s284_s0, %s155_s13  ;;  %s16_s10 = int_to_ptr.vmem [resolvable:$true] %s15_s10 }
   0x4   :  { %p159_p1 = scmp.lt.u32.totalorder %s155_s13, %s284_s0 }
   0x6   :  { %p161_p2 = pnand %p159_p1, %p156_p0 }
   0x8   :  { %164 = shalt.err (!%p161_p2)
}
   0x9   :  { %s165_s18 = scalar_lea.vmem %s16_s10, 128  ;;  %p170_p4 = scmp.lt.s32.totalorder %s16_s10, %s16_s10 }
   0xa   :  { %p166_p3 = scmp.ne.s32.totalorder %s16_s10, %s165_s18  ;;  %p171_p5 = scmp.lt.s32.totalorder %s165_s18, %s165_s18 }
   0xc   :  { %p172_p6 = por %p171_p5, %p170_p4 }
   0xe   :  { %p173_p7 = pnand %p172_p6, %p166_p3 }
  0x10   :  { %176 = shalt.err (!%p173_p7)
}
  0x11   :  { %s228_s19 = smov 64   ;;  %s229_s20 = smov 4  }
  0x12   :  { %21 = dma.hbm_to_vmem [thread:$0]  %s284_s0, 128, %s16_s10, [#allocation3], %s228_s19, %s228_s19, %s229_s20  }
  0x13   :  { %s230_s23 = smov [#allocation5]   ;;  %s177_s27 = scalar_lea.hbm %s285_s1, 128 }
  0x14   :  { %s28_s24 = sshll.u32 %s230_s23, 4  ;;  %p178_p8 = scmp.ne.s32.totalorder %s285_s1, %s177_s27  ;;  %s29_s24 = int_to_ptr.vmem [resolvable:$true] %s28_s24 }
  0x15   :  { %p181_p9 = scmp.lt.u32.totalorder %s177_s27, %s285_s1 }
  0x17   :  { %p183_p10 = pnand %p181_p9, %p178_p8 }
  0x19   :  { %186 = shalt.err (!%p183_p10)
}
  0x1a   :  { %s187_s4 = scalar_lea.vmem %s29_s24, 128  ;;  %p192_p12 = scmp.lt.s32.totalorder %s29_s24, %s29_s24 }
  0x1b   :  { %p188_p11 = scmp.ne.s32.totalorder %s29_s24, %s187_s4  ;;  %p193_p13 = scmp.lt.s32.totalorder %s187_s4, %s187_s4 }
  0x1d   :  { %p194_p0 = por %p193_p13, %p192_p12 }
  0x1f   :  { %p195_p1 = pnand %p194_p0, %p188_p11 }
  0x21   :  { %198 = shalt.err (!%p195_p1)
}
  0x22   :  { %31 = dma.hbm_to_vmem [thread:$0]  %s285_s1, 128, %s29_s24, [#allocation6]  }
  0x23   :  { %221 = dma.done.wait [#allocation3], 128  }
  0x24   :  { %222 = vsyncadd [#allocation3], 4294967168 }
  0x25   :  { %223 = dma.done.wait [#allocation6], 128  }
  0x26   :  { %224 = vsyncadd [#allocation6], 4294967168  ;;  %v144_v0 = vld [vmem:[#allocation2] sm:$0xff]   ;;  %vm42_vm0 = vcmask 261120   ;;  %v59_v1 = vld [vmem:[#allocation5] sm:$0xff]  ;;  %v60_v5 = vlaneseq  ;;  %vm89_vm1 = vcmask 1041409  }
  0x27   :  { %v145_v2 = vunpack.c.l.bf16 %v144_v0  ;;  %v146_v3 = vunpack.c.h.bf16 %v144_v0  ;;  %v66_v4 = vadd.f32 1e-05, %v59_v1  ;;  %vm92_vm2 = vcmask 254976   ;;  %s231_s1 = smov 32   ;;  %s232_s6 = smov [#allocation7]  }
  0x28   :  { %v61_v12 = vshrl.u32 %v60_v5, 7  ;;  %s133_s7 = sshll.u32 %s232_s6, 4  ;;  %vm125_vm3 = vcmask 517376   ;;  %s134_s7 = int_to_ptr.vmem [resolvable:$true] %s133_s7 }
  0x29   :  { %v43_v6 = vsel %vm42_vm0, %v145_v2, 0.0  ;;  %v50_v7 = vsel %vm42_vm0, %v146_v3, 0.0  ;;  %153 = vrsqrt.f32 %v66_v4  ;;  %s199_s8 = scalar_lea.vmem %s134_s7, 32  ;;  %p204_p3 = scmp.lt.s32.totalorder %s134_s7, %s134_s7 }
  0x2a   :  { %v44_v8 = vrot.slane %v43_v6, 4  ;;  %v51_v9 = vrot.slane %v50_v7, 4  ;;  %v62_v17 = vsub.s32 2, %v61_v12  ;;  %v96_v18 = vsub.s32 6, %v61_v12  ;;  %p200_p2 = scmp.ne.s32.totalorder %s134_s7, %s199_s8  ;;  %p205_p4 = scmp.lt.s32.totalorder %s199_s8, %s199_s8 }
  0x2b   :  { %v70_v21 = vsub.s32 3, %v61_v12  ;;  %v102_v22 = vsub.s32 7, %v61_v12  ;;  %v76_v24 = vsub.s32 0, %v61_v12  ;;  %v108_v25 = vsub.s32 4, %v61_v12 }
  0x2c   :  { %v45_v10 = vadd.f32 %v44_v8, %v43_v6  ;;  %v52_v11 = vadd.f32 %v51_v9, %v50_v7  ;;  %v63_v28 = vrot.slane %v59_v1, %v62_v17  ;;  %v97_v29 = vrot.slane %v59_v1, %v96_v18  ;;  %p206_p5 = por %p205_p4, %p204_p3 }
  0x2d   :  { %v82_v30 = vsub.s32 1, %v61_v12  ;;  %v114_v31 = vsub.s32 5, %v61_v12  ;;  %v77_v36 = vrot.slane %v59_v1, %v76_v24  ;;  %v109_v37 = vrot.slane %v59_v1, %v108_v25 }
  0x2e   :  { %v46_v13 = vrot.slane %v45_v10, 2  ;;  %v53_v14 = vrot.slane %v52_v11, 2  ;;  %p207_p6 = pnand %p206_p5, %p200_p2 }
  0x2f   :  { %v83_v42 = vrot.slane %v59_v1, %v82_v30  ;;  %v115_v43 = vrot.slane %v59_v1, %v114_v31 }
  0x30   :  { %v47_v15 = vadd.f32 %v46_v13, %v45_v10  ;;  %v54_v16 = vadd.f32 %v53_v14, %v52_v11 }
  0x32   :  { %v48_v19 = vrot.slane %v47_v15, 1  ;;  %v55_v20 = vrot.slane %v54_v16, 1 }
  0x33   :  { %v154_v23 = vpop.eup %153 }
  0x34   :  { %v49_v26 = vadd.f32 %v48_v19, %v47_v15  ;;  %v56_v27 = vadd.f32 %v55_v20, %v54_v16  ;;  %v71_v34 = vrot.slane %v154_v23, %v70_v21  ;;  %v103_v35 = vrot.slane %v154_v23, %v102_v22 }
  0x36   :  { %v57_v32 = vmul.f32 0.125, %v49_v26  ;;  %v58_v33 = vmul.f32 0.125, %v56_v27 }
  0x38   :  { %v64_v38 = vsub.f32 %v57_v32, %v63_v28  ;;  %v65_v39 = vsub.f32 %v58_v33, %v63_v28  ;;  %v98_v40 = vsub.f32 %v57_v32, %v97_v29  ;;  %v99_v41 = vsub.f32 %v58_v33, %v97_v29 }
  0x3a   :  { %v72_v44 = vmul.f32 %v71_v34, %v64_v38  ;;  %v73_v45 = vmul.f32 %v71_v34, %v65_v39  ;;  %v104_v46 = vmul.f32 %v103_v35, %v98_v40  ;;  %v105_v47 = vmul.f32 %v103_v35, %v99_v41 }
  0x3c   :  { %v78_v48 = vmul.f32 %v77_v36, %v72_v44  ;;  %v79_v49 = vmul.f32 %v77_v36, %v73_v45  ;;  %v110_v50 = vmul.f32 %v109_v37, %v104_v46  ;;  %v111_v51 = vmul.f32 %v109_v37, %v105_v47 }
  0x3e   :  { %v84_v52 = vadd.f32 %v83_v42, %v78_v48  ;;  %v85_v53 = vadd.f32 %v83_v42, %v79_v49  ;;  %v116_v54 = vadd.f32 %v115_v43, %v110_v50  ;;  %v117_v55 = vadd.f32 %v115_v43, %v111_v51 }
  0x40   :  { %v88_v56 = vrot.slane %v85_v53, 7  ;;  %v120_v57 = vrot.slane %v117_v55, 7 }
  0x42   :  { %v90_v58 = vsel %vm89_vm1, %v88_v56, %v84_v52  ;;  %v121_v59 = vsel %vm89_vm1, %v120_v57, %v116_v54 }
  0x43   :  { %122 = vrot.lane.b32.xlu0 %v121_v59, %s231_s1  ;;  %93 = vst.msk [vmem:[#allocation7] sm:$0x3] %vm92_vm2, %v90_v58 }
  0xb5   :  { %v123_v60 = vpop.permute.xlu0 %122 }
  0xb6   :  { %126 = vst.msk [vmem:[#allocation7] sm:$0x3] %vm125_vm3, %v123_v60 }
  0xb7   :  { %210 = shalt.err (!%p207_p6)
}
  0xb8   :  { %s211_s11 = scalar_lea.hbm %s286_s2, 32 }
  0xb9   :  { %p212_p7 = scmp.ne.s32.totalorder %s286_s2, %s211_s11  ;;  %p215_p8 = scmp.lt.u32.totalorder %s211_s11, %s286_s2 }
  0xbb   :  { %p217_p9 = pnand %p215_p8, %p212_p7 }
  0xbd   :  { %220 = shalt.err (!%p217_p9)
}
  0xbe   :  { %136 = dma.vmem_to_hbm [thread:$0]  %s134_s7, 32, %s286_s2, [#allocation4]  }
  0xbf   :  { %225 = dma.done.wait [#allocation4], 32  }
  0xc0   :  { %226 = vsyncadd [#allocation4], 4294967264 }
  0xc1   :  { %140 = vsyncpa [#allocation3], 1 }
  0xc2   :  { %141 = vsyncpa [#allocation6], 1 }
  0xc3   :  { %142 = vsyncpa [#allocation4], 1 }

// kernel: tpu_custom_call.1
= control target key start
LH: loop header
LB: loop body
LE: loop exit
PB: predicated region body
PF: predicated region fallthrough
CT: control target
= control target key end

     0   :  { %7 = vsyncpa [#allocation3], 0  ;;  %s284_s0 = inlined_call_operand.hbm [shape: bf16[2,8,32], index: 0, kind: input, shape index: {}]   ;;  %s285_s1 = inlined_call_operand.hbm [shape: f32[8,32], index: 1, kind: input, shape index: {}]   ;;  %s286_s2 = inlined_call_operand.hbm [shape: f32[2,64], index: 2, kind: output, shape index: {}]  }
   0x1   :  { %8 = vsyncpa [#allocation6], 0 }
   0x2   :  { %9 = vsyncpa [#allocation4], 0  ;;  %s227_s9 = smov [#allocation2]   ;;  %s155_s13 = scalar_lea.hbm %s284_s0, 128 }
   0x3   :  { %s15_s10 = sshll.u32 %s227_s9, 4  ;;  %p156_p0 = scmp.ne.s32.totalorder %s284_s0, %s155_s13  ;;  %s16_s10 = int_to_ptr.vmem [resolvable:$true] %s15_s10 }
   0x4   :  { %p159_p1 = scmp.lt.u32.totalorder %s155_s13, %s284_s0 }
   0x6   :  { %p161_p2 = pnand %p159_p1, %p156_p0 }
   0x8   :  { %164 = shalt.err (!%p161_p2)
}
   0x9   :  { %s165_s18 = scalar_lea.vmem %s16_s10, 128  ;;  %p170_p4 = scmp.lt.s32.totalorder %s16_s10, %s16_s10 }
   0xa   :  { %p166_p3 = scmp.ne.s32.totalorder %s16_s10, %s165_s18  ;;  %p171_p5 = scmp.lt.s32.totalorder %s165_s18, %s165_s18 }
   0xc   :  { %p172_p6 = por %p171_p5, %p170_p4 }
   0xe   :  { %p173_p7 = pnand %p172_p6, %p166_p3 }
  0x10   :  { %176 = shalt.err (!%p173_p7)
}
  0x11   :  { %s228_s19 = smov 64   ;;  %s229_s20 = smov 4  }
  0x12   :  { %21 = dma.hbm_to_vmem [thread:$0]  %s284_s0, 128, %s16_s10, [#allocation3], %s228_s19, %s228_s19, %s229_s20  }
  0x13   :  { %s230_s23 = smov [#allocation5]   ;;  %s177_s27 = scalar_lea.hbm %s285_s1, 128 }
  0x14   :  { %s28_s24 = sshll.u32 %s230_s23, 4  ;;  %p178_p8 = scmp.ne.s32.totalorder %s285_s1, %s177_s27  ;;  %s29_s24 = int_to_ptr.vmem [resolvable:$true] %s28_s24 }
  0x15   :  { %p181_p9 = scmp.lt.u32.totalorder %s177_s27, %s285_s1 }
  0x17   :  { %p183_p10 = pnand %p181_p9, %p178_p8 }
  0x19   :  { %186 = shalt.err (!%p183_p10)
}
  0x1a   :  { %s187_s4 = scalar_lea.vmem %s29_s24, 128  ;;  %p192_p12 = scmp.lt.s32.totalorder %s29_s24, %s29_s24 }
  0x1b   :  { %p188_p11 = scmp.ne.s32.totalorder %s29_s24, %s187_s4  ;;  %p193_p13 = scmp.lt.s32.totalorder %s187_s4, %s187_s4 }
  0x1d   :  { %p194_p0 = por %p193_p13, %p192_p12 }
  0x1f   :  { %p195_p1 = pnand %p194_p0, %p188_p11 }
  0x21   :  { %198 = shalt.err (!%p195_p1)
}
  0x22   :  { %31 = dma.hbm_to_vmem [thread:$0]  %s285_s1, 128, %s29_s24, [#allocation6]  }
  0x23   :  { %221 = dma.done.wait [#allocation3], 128  }
  0x24   :  { %222 = vsyncadd [#allocation3], 4294967168 }
  0x25   :  { %223 = dma.done.wait [#allocation6], 128  }
  0x26   :  { %224 = vsyncadd [#allocation6], 4294967168  ;;  %v144_v0 = vld [vmem:[#allocation2] sm:$0xff]   ;;  %vm42_vm0 = vcmask 261120   ;;  %v59_v1 = vld [vmem:[#allocation5] sm:$0xff]  ;;  %v60_v5 = vlaneseq  ;;  %vm89_vm1 = vcmask 1041409  }
  0x27   :  { %v145_v2 = vunpack.c.l.bf16 %v144_v0  ;;  %v146_v3 = vunpack.c.h.bf16 %v144_v0  ;;  %v66_v4 = vadd.f32 1e-05, %v59_v1  ;;  %vm92_vm2 = vcmask 254976   ;;  %s231_s1 = smov 32   ;;  %s232_s6 = smov [#allocation7]  }
  0x28   :  { %v61_v12 = vshrl.u32 %v60_v5, 7  ;;  %s133_s7 = sshll.u32 %s232_s6, 4  ;;  %vm125_vm3 = vcmask 517376   ;;  %s134_s7 = int_to_ptr.vmem [resolvable:$true] %s133_s7 }
  0x29   :  { %v43_v6 = vsel %vm42_vm0, %v145_v2, 0.0  ;;  %v50_v7 = vsel %vm42_vm0, %v146_v3, 0.0  ;;  %153 = vrsqrt.f32 %v66_v4  ;;  %s199_s8 = scalar_lea.vmem %s134_s7, 32  ;;  %p204_p3 = scmp.lt.s32.totalorder %s134_s7, %s134_s7 }
  0x2a   :  { %v44_v8 = vrot.slane %v43_v6, 4  ;;  %v51_v9 = vrot.slane %v50_v7, 4  ;;  %v62_v17 = vsub.s32 2, %v61_v12  ;;  %v96_v18 = vsub.s32 6, %v61_v12  ;;  %p200_p2 = scmp.ne.s32.totalorder %s134_s7, %s199_s8  ;;  %p205_p4 = scmp.lt.s32.totalorder %s199_s8, %s199_s8 }
  0x2b   :  { %v70_v21 = vsub.s32 3, %v61_v12  ;;  %v102_v22 = vsub.s32 7, %v61_v12  ;;  %v76_v24 = vsub.s32 0, %v61_v12  ;;  %v108_v25 = vsub.s32 4, %v61_v12 }
  0x2c   :  { %v45_v10 = vadd.f32 %v44_v8, %v43_v6  ;;  %v52_v11 = vadd.f32 %v51_v9, %v50_v7  ;;  %v63_v28 = vrot.slane %v59_v1, %v62_v17  ;;  %v97_v29 = vrot.slane %v59_v1, %v96_v18  ;;  %p206_p5 = por %p205_p4, %p204_p3 }
  0x2d   :  { %v82_v30 = vsub.s32 1, %v61_v12  ;;  %v114_v31 = vsub.s32 5, %v61_v12  ;;  %v77_v36 = vrot.slane %v59_v1, %v76_v24  ;;  %v109_v37 = vrot.slane %v59_v1, %v108_v25 }
  0x2e   :  { %v46_v13 = vrot.slane %v45_v10, 2  ;;  %v53_v14 = vrot.slane %v52_v11, 2  ;;  %p207_p6 = pnand %p206_p5, %p200_p2 }
  0x2f   :  { %v83_v42 = vrot.slane %v59_v1, %v82_v30  ;;  %v115_v43 = vrot.slane %v59_v1, %v114_v31 }
  0x30   :  { %v47_v15 = vadd.f32 %v46_v13, %v45_v10  ;;  %v54_v16 = vadd.f32 %v53_v14, %v52_v11 }
  0x32   :  { %v48_v19 = vrot.slane %v47_v15, 1  ;;  %v55_v20 = vrot.slane %v54_v16, 1 }
  0x33   :  { %v154_v23 = vpop.eup %153 }
  0x34   :  { %v49_v26 = vadd.f32 %v48_v19, %v47_v15  ;;  %v56_v27 = vadd.f32 %v55_v20, %v54_v16  ;;  %v71_v34 = vrot.slane %v154_v23, %v70_v21  ;;  %v103_v35 = vrot.slane %v154_v23, %v102_v22 }
  0x36   :  { %v57_v32 = vmul.f32 0.125, %v49_v26  ;;  %v58_v33 = vmul.f32 0.125, %v56_v27 }
  0x38   :  { %v64_v38 = vsub.f32 %v57_v32, %v63_v28  ;;  %v65_v39 = vsub.f32 %v58_v33, %v63_v28  ;;  %v98_v40 = vsub.f32 %v57_v32, %v97_v29  ;;  %v99_v41 = vsub.f32 %v58_v33, %v97_v29 }
  0x3a   :  { %v72_v44 = vmul.f32 %v71_v34, %v64_v38  ;;  %v73_v45 = vmul.f32 %v71_v34, %v65_v39  ;;  %v104_v46 = vmul.f32 %v103_v35, %v98_v40  ;;  %v105_v47 = vmul.f32 %v103_v35, %v99_v41 }
  0x3c   :  { %v78_v48 = vmul.f32 %v77_v36, %v72_v44  ;;  %v79_v49 = vmul.f32 %v77_v36, %v73_v45  ;;  %v110_v50 = vmul.f32 %v109_v37, %v104_v46  ;;  %v111_v51 = vmul.f32 %v109_v37, %v105_v47 }
  0x3e   :  { %v84_v52 = vadd.f32 %v83_v42, %v78_v48  ;;  %v85_v53 = vadd.f32 %v83_v42, %v79_v49  ;;  %v116_v54 = vadd.f32 %v115_v43, %v110_v50  ;;  %v117_v55 = vadd.f32 %v115_v43, %v111_v51 }
  0x40   :  { %v88_v56 = vrot.slane %v85_v53, 7  ;;  %v120_v57 = vrot.slane %v117_v55, 7 }
  0x42   :  { %v90_v58 = vsel %vm89_vm1, %v88_v56, %v84_v52  ;;  %v121_v59 = vsel %vm89_vm1, %v120_v57, %v116_v54 }
  0x43   :  { %122 = vrot.lane.b32.xlu0 %v121_v59, %s231_s1  ;;  %93 = vst.msk [vmem:[#allocation7] sm:$0x3] %vm92_vm2, %v90_v58 }
  0xb5   :  { %v123_v60 = vpop.permute.xlu0 %122 }
  0xb6   :  { %126 = vst.msk [vmem:[#allocation7] sm:$0x3] %vm125_vm3, %v123_v60 }
  0xb7   :  { %210 = shalt.err (!%p207_p6)
}
  0xb8   :  { %s211_s11 = scalar_lea.hbm %s286_s2, 32 }
  0xb9   :  { %p212_p7 = scmp.ne.s32.totalorder %s286_s2, %s211_s11  ;;  %p215_p8 = scmp.lt.u32.totalorder %s211_s11, %s286_s2 }
  0xbb   :  { %p217_p9 = pnand %p215_p8, %p212_p7 }
  0xbd   :  { %220 = shalt.err (!%p217_p9)
}
  0xbe   :  { %136 = dma.vmem_to_hbm [thread:$0]  %s134_s7, 32, %s286_s2, [#allocation4]  }
  0xbf   :  { %225 = dma.done.wait [#allocation4], 32  }
  0xc0   :  { %226 = vsyncadd [#allocation4], 4294967264 }
  0xc1   :  { %140 = vsyncpa [#allocation3], 1 }
  0xc2   :  { %141 = vsyncpa [#allocation6], 1 }
  0xc3   :  { %142 = vsyncpa [#allocation4], 1 }

</bundles_post_ra>
